<compile_context>
chip_gen: v6e
topology: v6e:2x2x1
jax: 0.10.0
libtpu: 0.0.40
codegen_flags: <defaults>
</compile_context>

<pallas_src>
import functools
from typing import NamedTuple, Tuple

import jax
import jax.numpy as jnp
from jax.experimental import pallas as pl
from jax.experimental.pallas import tpu as pltpu


LANE = 128     # lane width (last dim)
SUBLANE = 8    # sublane width (second-to-last dim, f32)


def _round_up(x, m):
    return ((x + m - 1) // m) * m


# --------------------------------------------------------------------------
# Hardware-generation helpers (wrapper-side Python only).
# --------------------------------------------------------------------------
def _tpu_generation_info():
    """Returns (per-core VMEM capacity in bytes, megacore?)."""
    vmem_cap = 64 << 20          # conservative default (v7x per-TC VMEM)
    megacore = False
    try:
        kind = jax.devices()[0].device_kind.lower()
    except Exception:
        return vmem_cap, megacore
    if "v7" in kind or "7x" in kind:
        return 64 << 20, True            # v7x: 64 MiB / TC, 2 TCs per chip
    if "v4" in kind or "v5p" in kind:
        return 128 << 20, True           # megacore parts, 128 MiB
    if "v5" in kind or "v6" in kind:
        return 128 << 20, False          # v5e / v6e: single TC, 128 MiB
    return vmem_cap, megacore


def _choose_block_m(batch, megacore):
    """Large batch tiles amortize the ~0.35us per-step overhead (measured:
    512 -> 85%, 1024 -> 86% of HBM roofline). On single-TC parts use one
    maximal tile; on megacore parts split into 2 'parallel' steps only when
    each half still keeps >= 256 rows."""
    max_tile = 1024
    if batch <= max_tile:
        if megacore and batch >= 512:
            return max(_round_up((batch + 1) // 2, SUBLANE), SUBLANE)
        return max(_round_up(batch, SUBLANE), SUBLANE)
    return max_tile


# --------------------------------------------------------------------------
# One-time parameter preparation (pad + cast once, reuse across calls).
# --------------------------------------------------------------------------
class DecoderParams(NamedTuple):
    weights: Tuple[jax.Array, ...]   # bf16, (K_prev_padded_or_d_in, N_padded)
    biases: Tuple[jax.Array, ...]    # f32,  (1, N_padded)
    dims: Tuple[int, ...]            # original [d_in, h1, ..., d_out]
    dims_p: Tuple[int, ...]          # padded  [d_in, h1p, ..., d_out_p]


def prepare_decoder_params(weights, biases):
    """Pad every layer's N dim (and downstream K dims) to a 128 multiple,
    cast weights to bf16 (MXU native) and biases to f32.  The first layer's
    K dim stays at the true d_in so the streamed input is never padded.

    weights: list of (in_dim, out_dim) f32 arrays (PyTorch weight.T); last one
             is the reconstruction layer.
    biases:  list of (out_dim,) or (1, out_dim) f32 arrays matching `weights`.
    """
    assert len(weights) == len(biases) and len(weights) >= 1
    dims = [weights[0].shape[0]] + [w.shape[1] for w in weights]
    # NOTE: on v6e/v7x (2x256^2 MXU) rounding 129..256-wide hidden dims to 256
    # instead of 128 would fill the systolic array better; costless for
    # resident weights.  Kept at 128 here since the demo dims are small.
    dims_p = [dims[0]] + [_round_up(d, LANE) for d in dims[1:]]

    padded_w, padded_b = [], []
    for li, (w, b) in enumerate(zip(weights, biases)):
        di, do = dims[li], dims[li + 1]
        dip, dop = dims_p[li], dims_p[li + 1]
        wp = jnp.zeros((dip, dop), jnp.float32).at[:di, :do].set(
            w.astype(jnp.float32))
        bp = jnp.zeros((1, dop), jnp.float32).at[:, :do].set(
            jnp.reshape(b, (1, do)).astype(jnp.float32))
        padded_w.append(wp.astype(jnp.bfloat16))   # bf16 weights on the MXU
        padded_b.append(bp)                        # f32 biases / accumulation
    return DecoderParams(tuple(padded_w), tuple(padded_b),
                         tuple(dims), tuple(dims_p))


# --------------------------------------------------------------------------
# Kernel
# --------------------------------------------------------------------------
def _decoder_kernel(n_hidden, final_act, x_ref, *refs):
    """Fused MLP decoder: (Linear+ReLU) x n_hidden -> Linear -> optional act.

    refs = (w0, b0, w1, b1, ..., w_recon, b_recon, out_ref)
    Weights bf16 (MXU native), biases f32, f32 accumulation.
    """
    out_ref = refs[-1]
    p = refs[:-1]

    h = x_ref[...].astype(jnp.bfloat16)          # in-kernel cast (free, VPU)

    for i in range(n_hidden):                    # hidden Linear + ReLU
        z = jnp.dot(h, p[2 * i][...],
                    preferred_element_type=jnp.float32) + p[2 * i + 1][...]
        h = jnp.maximum(z, 0.0).astype(jnp.bfloat16)

    # Reconstruction layer (no ReLU).
    y = jnp.dot(h, p[2 * n_hidden][...],
                preferred_element_type=jnp.float32) + p[2 * n_hidden + 1][...]

    if final_act == "sigmoid":
        y = jax.nn.sigmoid(y)
    elif final_act == "tanh":
        y = jnp.tanh(y)
    elif final_act == "relu":
        y = jnp.maximum(y, 0.0)
    # final_act == '' -> identity (module default)

    out_ref[...] = y.astype(out_ref.dtype)


def _resident_spec(shape, single_buffer):
    """BlockSpec for a VMEM-resident parameter (constant block index).
    Single-buffering halves its VMEM footprint when supported."""
    if single_buffer and hasattr(pl, "Buffered"):
        try:
            return pl.BlockSpec(shape, lambda i: (0, 0),
                                pipeline_mode=pl.Buffered(1))
        except TypeError:
            pass
    return pl.BlockSpec(shape, lambda i: (0, 0))


# --------------------------------------------------------------------------
# Wrapper
# --------------------------------------------------------------------------
def decoder_forward(x, params: DecoderParams, *, final_act="",
                    block_m=None, out_dtype=jnp.float32):
    """Run the fused decoder MLP as a single Pallas kernel, tiled over batch.

    x:      (B, d_in) float array
    params: DecoderParams from prepare_decoder_params (prepared once).
    out_dtype: jnp.float32 (default) or jnp.bfloat16 (halves output HBM
               traffic -- useful on v5e's single store slot).
    """
    n_hidden = len(params.weights) - 1
    B, d_in = x.shape
    assert d_in == params.dims[0], "input feature dim mismatch"
    dims_p = params.dims_p
    d_out = params.dims[-1]

    vmem_cap, megacore = _tpu_generation_info()
    budget = int(vmem_cap * 0.70)          # resident-weight strategy guard

    if block_m is None:
        block_m = _choose_block_m(B, megacore)
    block_m = max(_round_up(block_m, SUBLANE), SUBLANE)

    out_itemsize = jnp.dtype(out_dtype).itemsize
    in_itemsize = jnp.dtype(x.dtype).itemsize
    param_bytes = (sum(int(w.size) * 2 for w in params.weights)
                   + sum(int(b.size) * 4 for b in params.biases))

    def tile_bytes(bm):
        in_b = 2 * bm * d_in * in_itemsize            # double-buffered input
        out_b = 2 * bm * dims_p[-1] * out_itemsize    # double-buffered output
        # f32 + bf16 copies of intermediate activations, plus slack.
        act_b = bm * sum(dims_p[1:]) * 6 + bm * max(dims_p) * 4
        return in_b + out_b + act_b

    # Budget check counts params double-buffered (worst case, in case the
    # single-buffer request falls back) plus internal-scratch headroom.
    while block_m > SUBLANE and 2 * param_bytes + tile_bytes(block_m) > budget:
        block_m = max(_round_up(block_m // 2, SUBLANE), SUBLANE)
    footprint = 2 * param_bytes + tile_bytes(block_m)
    if footprint > budget:
        # TODO(synk): tile weights over a K/N grid axis with a VMEM f32
        # accumulator instead of keeping them fully resident (needed on v7x's
        # 64 MiB/TC once hidden dims reach ~2048).
        raise ValueError(
            f"resident-weight VMEM estimate {footprint / 2**20:.1f} MiB "
            f"exceeds budget {budget / 2**20:.1f} MiB; switch to weight tiling")

    vmem_limit = int(min(vmem_cap * 0.9,
                         max(1.5 * footprint, 32 << 20)))

    # ---- Batch tiling (pad only if the tile does not divide B) ----
    B_pad = _round_up(B, block_m)
    grid = (B_pad // block_m,)
    x_p = x if B_pad == B else jnp.zeros((B_pad, d_in), x.dtype).at[:B].set(x)

    kernel = functools.partial(_decoder_kernel, n_hidden, final_act)

    def run(single_buffer):
        in_specs = [pl.BlockSpec((block_m, d_in), lambda i: (i, 0))]
        flat = []
        for w, b in zip(params.weights, params.biases):
            in_specs.append(_resident_spec(w.shape, single_buffer))
            in_specs.append(_resident_spec(b.shape, single_buffer))
            flat += [w, b]
        out_specs = pl.BlockSpec((block_m, dims_p[-1]), lambda i: (i, 0))
        return pl.pallas_call(
            kernel,
            out_shape=jax.ShapeDtypeStruct((B_pad, dims_p[-1]), out_dtype),
            grid=grid,
            in_specs=in_specs,
            out_specs=out_specs,
            compiler_params=pltpu.CompilerParams(
                dimension_semantics=("parallel",),
                vmem_limit_bytes=vmem_limit),
        )(x_p, *flat)

    try:
        out_p = run(True)
    except ValueError:
        raise
    except Exception:
        # Buffered(1) resident params unsupported on this build; retry with
        # default double buffering (identical numerics).
        out_p = run(False)

    # Avoid the post-kernel slice copy when nothing was padded.
    if B_pad == B and dims_p[-1] == d_out:
        return out_p
    return out_p[:B, :d_out]


# --------------------------------------------------------------------------
# Reference / init helpers
# --------------------------------------------------------------------------
def init_decoder_params(key, dimensions):
    """dimensions = [latent_dim, *hidden_dims, input_dim].
    hidden_dims = dimensions[:-1]; embedding_dim = dimensions[-1].
    Linear layers: hidden_dims[i] -> hidden_dims[i+1]; recon: hidden_dims[-1]
    -> embedding_dim.  PyTorch-Linear-style uniform(-1/sqrt(fan_in), ...)."""
    hidden_dims = dimensions[:-1]
    embedding_dim = dimensions[-1]
    layer_dims = [(hidden_dims[i], hidden_dims[i + 1])
                  for i in range(len(hidden_dims) - 1)]
    layer_dims.append((hidden_dims[-1], embedding_dim))

    weights, biases = [], []
    for (d_in, d_out) in layer_dims:
        key, wk, bk = jax.random.split(key, 3)
        bound = 1.0 / jnp.sqrt(float(d_in))
        weights.append(jax.random.uniform(wk, (d_in, d_out), jnp.float32,
                                          -bound, bound))
        biases.append(jax.random.uniform(bk, (1, d_out), jnp.float32,
                                         -bound, bound))
    return weights, biases


def _apply_final_act(y, final_act):
    if final_act == "sigmoid":
        return jax.nn.sigmoid(y)
    if final_act == "tanh":
        return jnp.tanh(y)
    if final_act == "relu":
        return jnp.maximum(y, 0.0)
    return y


def decoder_reference_f32(x, weights, biases, final_act=""):
    h = x
    for w, b in zip(weights[:-1], biases[:-1]):
        h = jnp.maximum(h @ w + b, 0.0)
    y = h @ weights[-1] + biases[-1]
    return _apply_final_act(y, final_act)


def decoder_reference_bf16(x, weights, biases, final_act=""):
    h = x.astype(jnp.bfloat16)
    for w, b in zip(weights[:-1], biases[:-1]):
        z = jnp.dot(h, w.astype(jnp.bfloat16),
                    preferred_element_type=jnp.float32) + b
        h = jnp.maximum(z, 0.0).astype(jnp.bfloat16)
    y = jnp.dot(h, weights[-1].astype(jnp.bfloat16),
                preferred_element_type=jnp.float32) + biases[-1]
    return _apply_final_act(y, final_act)


if __name__ == "__main__":
    # dimensions = [latent_dim, hidden..., input_dim]  (small demo shapes)
    dimensions = [8, 32, 64]
    batch = 16

    key = jax.random.PRNGKey(0)
    key, xk = jax.random.split(key)
    x = jax.random.normal(xk, (batch, dimensions[0]), jnp.float32)

    weights, biases = init_decoder_params(key, dimensions)
    params = prepare_decoder_params(weights, biases)   # pad/cast ONCE

    for act in ("", "sigmoid"):   # '' is the module's default configuration
        out = decoder_forward(x, params, final_act=act)
        out = jax.block_until_ready(out)
        assert out.shape == (batch, dimensions[-1])

        ref_bf16 = decoder_reference_bf16(x, weights, biases, final_act=act)
        ref_f32 = decoder_reference_f32(x, weights, biases, final_act=act)
        assert jnp.allclose(out, ref_bf16, atol=2e-4, rtol=2e-4), \
            f"mismatch vs bf16 reference (act={act!r})"
        assert jnp.allclose(out, ref_f32, atol=5e-2, rtol=5e-2), \
            f"mismatch vs f32 reference (act={act!r})"

    print("KERNEL_OK")
</pallas_src>

<mosaic_0001>
module attributes {stable_mosaic.version = 11 : i64} {
  func.func @_decoder_kernel(%arg0: i32, %arg1: memref<16x8xf32, #tpu.memory_space<vmem>>, %arg2: memref<8x128xbf16, #tpu.memory_space<vmem>>, %arg3: memref<1x128xf32, #tpu.memory_space<vmem>>, %arg4: memref<128x128xbf16, #tpu.memory_space<vmem>>, %arg5: memref<1x128xf32, #tpu.memory_space<vmem>>, %arg6: memref<16x128xf32, #tpu.memory_space<vmem>>) attributes {dimension_semantics = [#tpu.dimension_semantics<parallel>], iteration_bounds = array<i64: 1>, scalar_prefetch = 0 : i64, scratch_operands = 0 : i64, tpu.core_type = #tpu.core_type<tc>, window_params = [{transform_indices = @transform_0, window_bounds = array<i64: 16, 8>}, {pipeline_mode = #tpu.pipeline_mode<synchronous>, transform_indices = @transform_1, window_bounds = array<i64: 8, 128>}, {pipeline_mode = #tpu.pipeline_mode<synchronous>, transform_indices = @transform_2, window_bounds = array<i64: 1, 128>}, {pipeline_mode = #tpu.pipeline_mode<synchronous>, transform_indices = @transform_3, window_bounds = array<i64: 128, 128>}, {pipeline_mode = #tpu.pipeline_mode<synchronous>, transform_indices = @transform_4, window_bounds = array<i64: 1, 128>}, {transform_indices = @transform_5, window_bounds = array<i64: 16, 128>}]} {
    %c0 = arith.constant 0 : index
    %c0_0 = arith.constant 0 : index
    %0 = vector.load %arg1[%c0, %c0_0] : memref<16x8xf32, #tpu.memory_space<vmem>>, vector<16x8xf32>
    %1 = arith.truncf %0 : vector<16x8xf32> to vector<16x8xbf16>
    %c0_1 = arith.constant 0 : index
    %c0_2 = arith.constant 0 : index
    %2 = vector.load %arg2[%c0_1, %c0_2] : memref<8x128xbf16, #tpu.memory_space<vmem>>, vector<8x128xbf16>
    %cst = arith.constant dense<0.000000e+00> : vector<16x128xf32>
    %3 = tpu.matmul %1, %2, %cst {dimension_numbers = #tpu.dot_dimension_numbers<[1], [0], [0], [1], [0, 0, 1, 1], [], []>} : vector<16x8xbf16>, vector<8x128xbf16>, vector<16x128xf32> -> vector<16x128xf32>
    %c0_3 = arith.constant 0 : index
    %c0_4 = arith.constant 0 : index
    %4 = vector.load %arg3[%c0_3, %c0_4] : memref<1x128xf32, #tpu.memory_space<vmem>>, vector<1x128xf32>
    %5 = vector.broadcast %4 : vector<1x128xf32> to vector<16x128xf32>
    %6 = arith.addf %3, %5 : vector<16x128xf32>
    %cst_5 = arith.constant 0.000000e+00 : f32
    %7 = vector.broadcast %cst_5 : f32 to vector<16x128xf32>
    %8 = arith.maximumf %6, %7 : vector<16x128xf32>
    %9 = arith.truncf %8 : vector<16x128xf32> to vector<16x128xbf16>
    %c0_6 = arith.constant 0 : index
    %c0_7 = arith.constant 0 : index
    %10 = vector.load %arg4[%c0_6, %c0_7] : memref<128x128xbf16, #tpu.memory_space<vmem>>, vector<128x128xbf16>
    %cst_8 = arith.constant dense<0.000000e+00> : vector<16x128xf32>
    %11 = tpu.matmul %9, %10, %cst_8 {dimension_numbers = #tpu.dot_dimension_numbers<[1], [0], [0], [1], [0, 0, 1, 1], [], []>} : vector<16x128xbf16>, vector<128x128xbf16>, vector<16x128xf32> -> vector<16x128xf32>
    %c0_9 = arith.constant 0 : index
    %c0_10 = arith.constant 0 : index
    %12 = vector.load %arg5[%c0_9, %c0_10] : memref<1x128xf32, #tpu.memory_space<vmem>>, vector<1x128xf32>
    %13 = vector.broadcast %12 : vector<1x128xf32> to vector<16x128xf32>
    %14 = arith.addf %11, %13 : vector<16x128xf32>
    %c0_11 = arith.constant 0 : index
    %c0_12 = arith.constant 0 : index
    %15 = vector.load %arg6[%c0_11, %c0_12] : memref<16x128xf32, #tpu.memory_space<vmem>>, vector<16x128xf32>
    tpu.vector_store %arg6[%c0_11, %c0_12], %14 {strides = array<i32>} : memref<16x128xf32, #tpu.memory_space<vmem>>, vector<16x128xf32>,
    return
  }
  func.func @transform_0(%arg0: i32) -> (i32, i32) {
    %c0_i32 = arith.constant 0 : i32
    %c0_i32_0 = arith.constant 0 : i32
    return %arg0, %c0_i32 : i32, i32
  }
  func.func @transform_1(%arg0: i32) -> (i32, i32) {
    %c0_i32 = arith.constant 0 : i32
    %c0_i32_0 = arith.constant 0 : i32
    %c0_i32_1 = arith.constant 0 : i32
    return %c0_i32, %c0_i32_0 : i32, i32
  }
  func.func @transform_2(%arg0: i32) -> (i32, i32) {
    %c0_i32 = arith.constant 0 : i32
    %c0_i32_0 = arith.constant 0 : i32
    %c0_i32_1 = arith.constant 0 : i32
    return %c0_i32, %c0_i32_0 : i32, i32
  }
  func.func @transform_3(%arg0: i32) -> (i32, i32) {
    %c0_i32 = arith.constant 0 : i32
    %c0_i32_0 = arith.constant 0 : i32
    %c0_i32_1 = arith.constant 0 : i32
    return %c0_i32, %c0_i32_0 : i32, i32
  }
  func.func @transform_4(%arg0: i32) -> (i32, i32) {
    %c0_i32 = arith.constant 0 : i32
    %c0_i32_0 = arith.constant 0 : i32
    %c0_i32_1 = arith.constant 0 : i32
    return %c0_i32, %c0_i32_0 : i32, i32
  }
  func.func @transform_5(%arg0: i32) -> (i32, i32) {
    %c0_i32 = arith.constant 0 : i32
    %c0_i32_0 = arith.constant 0 : i32
    return %arg0, %c0_i32 : i32, i32
  }
}

module attributes {stable_mosaic.version = 11 : i64} {
  func.func @_decoder_kernel(%arg0: i32, %arg1: memref<16x8xf32, #tpu.memory_space<vmem>>, %arg2: memref<8x128xbf16, #tpu.memory_space<vmem>>, %arg3: memref<1x128xf32, #tpu.memory_space<vmem>>, %arg4: memref<128x128xbf16, #tpu.memory_space<vmem>>, %arg5: memref<1x128xf32, #tpu.memory_space<vmem>>, %arg6: memref<16x128xf32, #tpu.memory_space<vmem>>) attributes {dimension_semantics = [#tpu.dimension_semantics<parallel>], iteration_bounds = array<i64: 1>, scalar_prefetch = 0 : i64, scratch_operands = 0 : i64, tpu.core_type = #tpu.core_type<tc>, window_params = [{transform_indices = @transform_0, window_bounds = array<i64: 16, 8>}, {pipeline_mode = #tpu.pipeline_mode<synchronous>, transform_indices = @transform_1, window_bounds = array<i64: 8, 128>}, {pipeline_mode = #tpu.pipeline_mode<synchronous>, transform_indices = @transform_2, window_bounds = array<i64: 1, 128>}, {pipeline_mode = #tpu.pipeline_mode<synchronous>, transform_indices = @transform_3, window_bounds = array<i64: 128, 128>}, {pipeline_mode = #tpu.pipeline_mode<synchronous>, transform_indices = @transform_4, window_bounds = array<i64: 1, 128>}, {transform_indices = @transform_5, window_bounds = array<i64: 16, 128>}]} {
    %c0 = arith.constant 0 : index
    %c0_0 = arith.constant 0 : index
    %0 = vector.load %arg1[%c0, %c0_0] : memref<16x8xf32, #tpu.memory_space<vmem>>, vector<16x8xf32>
    %1 = arith.truncf %0 : vector<16x8xf32> to vector<16x8xbf16>
    %c0_1 = arith.constant 0 : index
    %c0_2 = arith.constant 0 : index
    %2 = vector.load %arg2[%c0_1, %c0_2] : memref<8x128xbf16, #tpu.memory_space<vmem>>, vector<8x128xbf16>
    %cst = arith.constant dense<0.000000e+00> : vector<16x128xf32>
    %3 = tpu.matmul %1, %2, %cst {dimension_numbers = #tpu.dot_dimension_numbers<[1], [0], [0], [1], [0, 0, 1, 1], [], []>} : vector<16x8xbf16>, vector<8x128xbf16>, vector<16x128xf32> -> vector<16x128xf32>
    %c0_3 = arith.constant 0 : index
    %c0_4 = arith.constant 0 : index
    %4 = vector.load %arg3[%c0_3, %c0_4] : memref<1x128xf32, #tpu.memory_space<vmem>>, vector<1x128xf32>
    %5 = vector.broadcast %4 : vector<1x128xf32> to vector<16x128xf32>
    %6 = arith.addf %3, %5 : vector<16x128xf32>
    %cst_5 = arith.constant 0.000000e+00 : f32
    %7 = vector.broadcast %cst_5 : f32 to vector<16x128xf32>
    %8 = arith.maximumf %6, %7 : vector<16x128xf32>
    %9 = arith.truncf %8 : vector<16x128xf32> to vector<16x128xbf16>
    %c0_6 = arith.constant 0 : index
    %c0_7 = arith.constant 0 : index
    %10 = vector.load %arg4[%c0_6, %c0_7] : memref<128x128xbf16, #tpu.memory_space<vmem>>, vector<128x128xbf16>
    %cst_8 = arith.constant dense<0.000000e+00> : vector<16x128xf32>
    %11 = tpu.matmul %9, %10, %cst_8 {dimension_numbers = #tpu.dot_dimension_numbers<[1], [0], [0], [1], [0, 0, 1, 1], [], []>} : vector<16x128xbf16>, vector<128x128xbf16>, vector<16x128xf32> -> vector<16x128xf32>
    %c0_9 = arith.constant 0 : index
    %c0_10 = arith.constant 0 : index
    %12 = vector.load %arg5[%c0_9, %c0_10] : memref<1x128xf32, #tpu.memory_space<vmem>>, vector<1x128xf32>
    %13 = vector.broadcast %12 : vector<1x128xf32> to vector<16x128xf32>
    %14 = arith.addf %11, %13 : vector<16x128xf32>
    %c0_11 = arith.constant 0 : index
    %c0_12 = arith.constant 0 : index
    %15 = vector.load %arg6[%c0_11, %c0_12] : memref<16x128xf32, #tpu.memory_space<vmem>>, vector<16x128xf32>
    tpu.vector_store %arg6[%c0_11, %c0_12], %14 {strides = array<i32>} : memref<16x128xf32, #tpu.memory_space<vmem>>, vector<16x128xf32>,
    return
  }
  func.func @transform_0(%arg0: i32) -> (i32, i32) {
    %c0_i32 = arith.constant 0 : i32
    %c0_i32_0 = arith.constant 0 : i32
    return %arg0, %c0_i32 : i32, i32
  }
  func.func @transform_1(%arg0: i32) -> (i32, i32) {
    %c0_i32 = arith.constant 0 : i32
    %c0_i32_0 = arith.constant 0 : i32
    %c0_i32_1 = arith.constant 0 : i32
    return %c0_i32, %c0_i32_0 : i32, i32
  }
  func.func @transform_2(%arg0: i32) -> (i32, i32) {
    %c0_i32 = arith.constant 0 : i32
    %c0_i32_0 = arith.constant 0 : i32
    %c0_i32_1 = arith.constant 0 : i32
    return %c0_i32, %c0_i32_0 : i32, i32
  }
  func.func @transform_3(%arg0: i32) -> (i32, i32) {
    %c0_i32 = arith.constant 0 : i32
    %c0_i32_0 = arith.constant 0 : i32
    %c0_i32_1 = arith.constant 0 : i32
    return %c0_i32, %c0_i32_0 : i32, i32
  }
  func.func @transform_4(%arg0: i32) -> (i32, i32) {
    %c0_i32 = arith.constant 0 : i32
    %c0_i32_0 = arith.constant 0 : i32
    %c0_i32_1 = arith.constant 0 : i32
    return %c0_i32, %c0_i32_0 : i32, i32
  }
  func.func @transform_5(%arg0: i32) -> (i32, i32) {
    %c0_i32 = arith.constant 0 : i32
    %c0_i32_0 = arith.constant 0 : i32
    return %arg0, %c0_i32 : i32, i32
  }
}

</mosaic_0001>

<bundles_post_ra>
// kernel: tpu_custom_call.1
= control target key start
LH: loop header
LB: loop body
LE: loop exit
PB: predicated region body
PF: predicated region fallthrough
CT: control target
= control target key end

     0   :  { %10 = vsyncpa [#allocation3], 0  ;;  %s397_s0 = inlined_call_operand.vmem [shape: f32[16,8], index: 0, kind: input, shape index: {}]   ;;  %s398_s1 = inlined_call_operand.vmem [shape: bf16[8,128], index: 1, kind: input, shape index: {}]   ;;  %s399_s2 = inlined_call_operand.vmem [shape: f32[1,128], index: 2, kind: input, shape index: {}]   ;;  %s400_s3 = inlined_call_operand.hbm [shape: bf16[128,128], index: 3, kind: input, shape index: {}]   ;;  %s401_s4 = inlined_call_operand.vmem [shape: f32[1,128], index: 4, kind: input, shape index: {}]   ;;  %s402_s5 = inlined_call_operand.hbm [shape: f32[16,128], index: 5, kind: output, shape index: {}]  }
   0x1   :  { %11 = vsyncpa [#allocation4], 0  ;;  %s338_s18 = smov [#allocation2]  }
   0x2   :  { %s23_s19 = sshll.u32 %s338_s18, 4  ;;  %s24_s19 = int_to_ptr.vmem [resolvable:$true] %s23_s19 }
   0x3   :  { %s302_s20 = scalar_lea.vmem %s24_s19, 1024  ;;  %p307_p1 = scmp.lt.s32.totalorder %s24_s19, %s24_s19 }
   0x4   :  { %p303_p0 = scmp.ne.s32.totalorder %s24_s19, %s302_s20  ;;  %p308_p2 = scmp.lt.s32.totalorder %s302_s20, %s302_s20 }
   0x6   :  { %p309_p3 = por %p308_p2, %p307_p1 }
   0x8   :  { %p310_p4 = pnand %p309_p3, %p303_p0 }
   0xa   :  { %313 = shalt.err (!%p310_p4)
}
   0xb   :  { %s339_s21 = smov 64   ;;  %s340_s22 = smov 4  }
   0xc   :  { %29 = dma.hbm_to_vmem [thread:$0]  %s400_s3, 1024, %s24_s19, [#allocation3], %s339_s21, %s339_s21, %s340_s22  }
   0xd   :  { %334 = dma.done.wait [#allocation3], 1024  }
   0xe   :  { %335 = vsyncadd [#allocation3], 4294966272  ;;  %v341_v0 = vmov 0.0   ;;  %vm342_vm0 = vmmov 0   ;;  %vm51_vm1 = vcmask 1043456   ;;  %v36_v2 = vld [vmem:[%s397_s0] sm:$0xff] }
   0xf   :  { %252 = vmatprep.subr.bf16.mxu0 %v341_v0  ;;  %254 = vmatprep.mubr.msk.bf16.mxu0 %vm342_vm0, %v341_v0  ;;  %v39_v1 = vld [vmem:[%s398_s1] sm:$0xf]  ;;  %v37_v3 = vld [vmem:[%s397_s0 + $0x8] sm:$0xff]  ;;  %v286_v6 = vld [vmem:[#allocation2 + $0x38] sm:$0xff]   ;;  %vm47_vm2 = vcmask 64512   ;;  %s343_s7 = smov [#allocation5]  }
  0x10   :  { %258 = vmatprep.subr.bf16.mxu1 %v341_v0  ;;  %274 = vmatprep.mubr.msk.bf16.mxu1 %vm342_vm0, %v341_v0  ;;  %v53_v4 = vsel %vm51_vm1, %v39_v1, 0  ;;  %v38_v5 = vpack.c.bf16 %v37_v3, %v36_v2  ;;  %v287_v7 = vld [vmem:[#allocation2 + $0x30] sm:$0xff]   ;;  %v288_v8 = vld [vmem:[#allocation2 + $0x28] sm:$0xff]   ;;  %v289_v9 = vld [vmem:[#allocation2 + $0x20] sm:$0xff]   ;;  %s218_s8 = sshll.u32 %s343_s7, 4  ;;  %s219_s8 = int_to_ptr.vmem [resolvable:$true] %s218_s8 }
  0x11   :  { %253 = vmatpush3.bf16.msra.mxu0 %v53_v4  ;;  %259 = vmatpush3.bf16.msra.mxu1 %v286_v6  ;;  %v290_v10 = vld [vmem:[#allocation2 + $0x18] sm:$0xff]   ;;  %v291_v11 = vld [vmem:[#allocation2 + $0x10] sm:$0xff]   ;;  %v292_v12 = vld [vmem:[#allocation2 + $0x8] sm:$0xff]   ;;  %p319_p6 = scmp.lt.s32.totalorder %s219_s8, %s219_s8 }
  0x12   :  { %260 = vmatprep.subr.bf16.mxu1 %v341_v0  ;;  %v293_v13 = vld [vmem:[#allocation2] sm:$0xff]  }
  0x13   :  { %v230_v14 = vld [vmem:[%s399_s2] ss:$0 sm:$0xff]  ;;  %s314_s2 = scalar_lea.vmem %s219_s8, 256 }
  0x14   :  { %255 = vmatmul.mubr.msk.bf16.vlgmr.msra.gmra.mxu0 %vm47_vm2, %v38_v5  ;;  %v232_v24 = vld [vmem:[%s401_s4] ss:$0 sm:$0xff]  ;;  %p315_p5 = scmp.ne.s32.totalorder %s219_s8, %s314_s2  ;;  %p320_p7 = scmp.lt.s32.totalorder %s314_s2, %s314_s2 }
  0x15   :  { %261 = vmatpush3.bf16.msra.mxu1 %v287_v7 }
  0x16   :  { %262 = vmatprep.subr.bf16.mxu1 %v341_v0  ;;  %p321_p8 = por %p320_p7, %p319_p6 }
  0x18   :  { %p322_p9 = pnand %p321_p8, %p315_p5 }
  0x19   :  { %263 = vmatpush3.bf16.msra.mxu1 %v288_v8 }
  0x1a   :  { %264 = vmatprep.subr.bf16.mxu1 %v341_v0 }
  0x1d   :  { %265 = vmatpush3.bf16.msra.mxu1 %v289_v9 }
  0x1e   :  { %266 = vmatprep.subr.bf16.mxu1 %v341_v0 }
  0x21   :  { %267 = vmatpush3.bf16.msra.mxu1 %v290_v10 }
  0x22   :  { %268 = vmatprep.subr.bf16.mxu1 %v341_v0 }
  0x25   :  { %269 = vmatpush3.bf16.msra.mxu1 %v291_v11 }
  0x26   :  { %270 = vmatprep.subr.bf16.mxu1 %v341_v0 }
  0x29   :  { %271 = vmatpush3.bf16.msra.mxu1 %v292_v12 }
  0x2a   :  { %272 = vmatprep.subr.bf16.mxu1 %v341_v0 }
  0x2d   :  { %273 = vmatpush3.bf16.msra.mxu1 %v293_v13 }
  0xd4   :  { %v89_v15 = vpop.f32.mrf.mxu0 }
  0xd5   :  { %v90_v17 = vadd.f32 %v230_v14, %v89_v15 }
  0xd6   :  { %v256_v16 = vpop.f32.mrf.mxu0 }
  0xd7   :  { %v96_v21 = vmax.f32 %v90_v17, 0.0 }
  0xd8   :  { %v92_v18 = vpop.f32.mrf.mxu0 }
  0xd9   :  { %v93_v19 = vadd.f32 %v230_v14, %v92_v18 }
  0xda   :  { %v257_v20 = vpop.f32.mrf.mxu0 }
  0xdb   :  { %v97_v22 = vmax.f32 %v93_v19, 0.0 }
  0xdd   :  { %v98_v23 = vpack.c.bf16 %v97_v22, %v96_v21 }
  0xdf   :  { %275 = vmatmul.mubr.bf16.vlgmr.msra.gmra.mxu1 %v98_v23 }
 0x19f   :  { %v204_v25 = vpop.f32.mrf.mxu1 }
 0x1a0   :  { %v205_v26 = vadd.f32 %v232_v24, %v204_v25 }
 0x1a1   :  { %v276_v27 = vpop.f32.mrf.mxu1 }
 0x1a2   :  { %211 = vst [vmem:[#allocation5] sm:$0xff] %v205_v26 }
 0x1a3   :  { %v207_v28 = vpop.f32.mrf.mxu1 }
 0x1a4   :  { %v208_v29 = vadd.f32 %v232_v24, %v207_v28 }
 0x1a5   :  { %v277_v30 = vpop.f32.mrf.mxu1 }
 0x1a6   :  { %212 = vst [vmem:[#allocation5 + $0x8] sm:$0xff] %v208_v29 }
 0x1a7   :  { %325 = shalt.err (!%p322_p9)
}
 0x1a8   :  { %s344_s9 = smov 128   ;;  %s345_s4 = smov 8  }
 0x1a9   :  { %224 = dma.vmem_to_hbm [thread:$0]  %s219_s8, 256, %s402_s5, [#allocation4], %s344_s9, %s344_s9, %s345_s4  }
 0x1aa   :  { %336 = dma.done.wait [#allocation4], 256  }
 0x1ab   :  { %337 = vsyncadd [#allocation4], 4294967040 }
 0x1ac   :  { %228 = vsyncpa [#allocation3], 1 }
 0x1ad   :  { %229 = vsyncpa [#allocation4], 1 }

// kernel: tpu_custom_call.1
= control target key start
LH: loop header
LB: loop body
LE: loop exit
PB: predicated region body
PF: predicated region fallthrough
CT: control target
= control target key end

     0   :  { %10 = vsyncpa [#allocation3], 0  ;;  %s397_s0 = inlined_call_operand.vmem [shape: f32[16,8], index: 0, kind: input, shape index: {}]   ;;  %s398_s1 = inlined_call_operand.vmem [shape: bf16[8,128], index: 1, kind: input, shape index: {}]   ;;  %s399_s2 = inlined_call_operand.vmem [shape: f32[1,128], index: 2, kind: input, shape index: {}]   ;;  %s400_s3 = inlined_call_operand.hbm [shape: bf16[128,128], index: 3, kind: input, shape index: {}]   ;;  %s401_s4 = inlined_call_operand.vmem [shape: f32[1,128], index: 4, kind: input, shape index: {}]   ;;  %s402_s5 = inlined_call_operand.hbm [shape: f32[16,128], index: 5, kind: output, shape index: {}]  }
   0x1   :  { %11 = vsyncpa [#allocation4], 0  ;;  %s338_s18 = smov [#allocation2]  }
   0x2   :  { %s23_s19 = sshll.u32 %s338_s18, 4  ;;  %s24_s19 = int_to_ptr.vmem [resolvable:$true] %s23_s19 }
   0x3   :  { %s302_s20 = scalar_lea.vmem %s24_s19, 1024  ;;  %p307_p1 = scmp.lt.s32.totalorder %s24_s19, %s24_s19 }
   0x4   :  { %p303_p0 = scmp.ne.s32.totalorder %s24_s19, %s302_s20  ;;  %p308_p2 = scmp.lt.s32.totalorder %s302_s20, %s302_s20 }
   0x6   :  { %p309_p3 = por %p308_p2, %p307_p1 }
   0x8   :  { %p310_p4 = pnand %p309_p3, %p303_p0 }
   0xa   :  { %313 = shalt.err (!%p310_p4)
}
   0xb   :  { %s339_s21 = smov 64   ;;  %s340_s22 = smov 4  }
   0xc   :  { %29 = dma.hbm_to_vmem [thread:$0]  %s400_s3, 1024, %s24_s19, [#allocation3], %s339_s21, %s339_s21, %s340_s22  }
   0xd   :  { %334 = dma.done.wait [#allocation3], 1024  }
   0xe   :  { %335 = vsyncadd [#allocation3], 4294966272  ;;  %v341_v0 = vmov 0.0   ;;  %vm342_vm0 = vmmov 0   ;;  %vm51_vm1 = vcmask 1043456   ;;  %v36_v2 = vld [vmem:[%s397_s0] sm:$0xff] }
   0xf   :  { %252 = vmatprep.subr.bf16.mxu0 %v341_v0  ;;  %254 = vmatprep.mubr.msk.bf16.mxu0 %vm342_vm0, %v341_v0  ;;  %v39_v1 = vld [vmem:[%s398_s1] sm:$0xf]  ;;  %v37_v3 = vld [vmem:[%s397_s0 + $0x8] sm:$0xff]  ;;  %v286_v6 = vld [vmem:[#allocation2 + $0x38] sm:$0xff]   ;;  %vm47_vm2 = vcmask 64512   ;;  %s343_s7 = smov [#allocation5]  }
  0x10   :  { %258 = vmatprep.subr.bf16.mxu1 %v341_v0  ;;  %274 = vmatprep.mubr.msk.bf16.mxu1 %vm342_vm0, %v341_v0  ;;  %v53_v4 = vsel %vm51_vm1, %v39_v1, 0  ;;  %v38_v5 = vpack.c.bf16 %v37_v3, %v36_v2  ;;  %v287_v7 = vld [vmem:[#allocation2 + $0x30] sm:$0xff]   ;;  %v288_v8 = vld [vmem:[#allocation2 + $0x28] sm:$0xff]   ;;  %v289_v9 = vld [vmem:[#allocation2 + $0x20] sm:$0xff]   ;;  %s218_s8 = sshll.u32 %s343_s7, 4  ;;  %s219_s8 = int_to_ptr.vmem [resolvable:$true] %s218_s8 }
  0x11   :  { %253 = vmatpush3.bf16.msra.mxu0 %v53_v4  ;;  %259 = vmatpush3.bf16.msra.mxu1 %v286_v6  ;;  %v290_v10 = vld [vmem:[#allocation2 + $0x18] sm:$0xff]   ;;  %v291_v11 = vld [vmem:[#allocation2 + $0x10] sm:$0xff]   ;;  %v292_v12 = vld [vmem:[#allocation2 + $0x8] sm:$0xff]   ;;  %p319_p6 = scmp.lt.s32.totalorder %s219_s8, %s219_s8 }
  0x12   :  { %260 = vmatprep.subr.bf16.mxu1 %v341_v0  ;;  %v293_v13 = vld [vmem:[#allocation2] sm:$0xff]  }
  0x13   :  { %v230_v14 = vld [vmem:[%s399_s2] ss:$0 sm:$0xff]  ;;  %s314_s2 = scalar_lea.vmem %s219_s8, 256 }
  0x14   :  { %255 = vmatmul.mubr.msk.bf16.vlgmr.msra.gmra.mxu0 %vm47_vm2, %v38_v5  ;;  %v232_v24 = vld [vmem:[%s401_s4] ss:$0 sm:$0xff]  ;;  %p315_p5 = scmp.ne.s32.totalorder %s219_s8, %s314_s2  ;;  %p320_p7 = scmp.lt.s32.totalorder %s314_s2, %s314_s2 }
  0x15   :  { %261 = vmatpush3.bf16.msra.mxu1 %v287_v7 }
  0x16   :  { %262 = vmatprep.subr.bf16.mxu1 %v341_v0  ;;  %p321_p8 = por %p320_p7, %p319_p6 }
  0x18   :  { %p322_p9 = pnand %p321_p8, %p315_p5 }
  0x19   :  { %263 = vmatpush3.bf16.msra.mxu1 %v288_v8 }
  0x1a   :  { %264 = vmatprep.subr.bf16.mxu1 %v341_v0 }
  0x1d   :  { %265 = vmatpush3.bf16.msra.mxu1 %v289_v9 }
  0x1e   :  { %266 = vmatprep.subr.bf16.mxu1 %v341_v0 }
  0x21   :  { %267 = vmatpush3.bf16.msra.mxu1 %v290_v10 }
  0x22   :  { %268 = vmatprep.subr.bf16.mxu1 %v341_v0 }
  0x25   :  { %269 = vmatpush3.bf16.msra.mxu1 %v291_v11 }
  0x26   :  { %270 = vmatprep.subr.bf16.mxu1 %v341_v0 }
  0x29   :  { %271 = vmatpush3.bf16.msra.mxu1 %v292_v12 }
  0x2a   :  { %272 = vmatprep.subr.bf16.mxu1 %v341_v0 }
  0x2d   :  { %273 = vmatpush3.bf16.msra.mxu1 %v293_v13 }
  0xd4   :  { %v89_v15 = vpop.f32.mrf.mxu0 }
  0xd5   :  { %v90_v17 = vadd.f32 %v230_v14, %v89_v15 }
  0xd6   :  { %v256_v16 = vpop.f32.mrf.mxu0 }
  0xd7   :  { %v96_v21 = vmax.f32 %v90_v17, 0.0 }
  0xd8   :  { %v92_v18 = vpop.f32.mrf.mxu0 }
  0xd9   :  { %v93_v19 = vadd.f32 %v230_v14, %v92_v18 }
  0xda   :  { %v257_v20 = vpop.f32.mrf.mxu0 }
  0xdb   :  { %v97_v22 = vmax.f32 %v93_v19, 0.0 }
  0xdd   :  { %v98_v23 = vpack.c.bf16 %v97_v22, %v96_v21 }
  0xdf   :  { %275 = vmatmul.mubr.bf16.vlgmr.msra.gmra.mxu1 %v98_v23 }
 0x19f   :  { %v204_v25 = vpop.f32.mrf.mxu1 }
 0x1a0   :  { %v205_v26 = vadd.f32 %v232_v24, %v204_v25 }
 0x1a1   :  { %v276_v27 = vpop.f32.mrf.mxu1 }
 0x1a2   :  { %211 = vst [vmem:[#allocation5] sm:$0xff] %v205_v26 }
 0x1a3   :  { %v207_v28 = vpop.f32.mrf.mxu1 }
 0x1a4   :  { %v208_v29 = vadd.f32 %v232_v24, %v207_v28 }
 0x1a5   :  { %v277_v30 = vpop.f32.mrf.mxu1 }
 0x1a6   :  { %212 = vst [vmem:[#allocation5 + $0x8] sm:$0xff] %v208_v29 }
 0x1a7   :  { %325 = shalt.err (!%p322_p9)
}
 0x1a8   :  { %s344_s9 = smov 128   ;;  %s345_s4 = smov 8  }
 0x1a9   :  { %224 = dma.vmem_to_hbm [thread:$0]  %s219_s8, 256, %s402_s5, [#allocation4], %s344_s9, %s344_s9, %s345_s4  }
 0x1aa   :  { %336 = dma.done.wait [#allocation4], 256  }
 0x1ab   :  { %337 = vsyncadd [#allocation4], 4294967040 }
 0x1ac   :  { %228 = vsyncpa [#allocation3], 1 }
 0x1ad   :  { %229 = vsyncpa [#allocation4], 1 }

</bundles_post_ra>
